<compile_context>
chip_gen: v7x
topology: tpu7x:2x2x1
jax: 0.10.0
libtpu: 0.0.40
codegen_flags: <defaults>
</compile_context>

<pallas_src>
import jax
import jax.numpy as jnp
from jax.experimental import pallas as pl
from jax.experimental.pallas import tpu as pltpu


def cnn_kernel(x_ref, cmpd_ref, pavg_ref, gamma_ref, beta_ref,
               m1_ref, b1_ref, we_ref, wec_ref, be_ref,
               m2_ref, b2_ref, wf_ref, wfc_ref, bf_ref,
               out_ref, single_ref):
    x = x_ref[...]                          # (B, Cin*L) channel-major flatten
    cmpd = cmpd_ref[...]                    # (B, Cd)
    P = pavg_ref[...]                       # (Cin*L, Cin*L) = kron(I, 1_{LxL})/(B*L)

    # ---- BatchNorm1d, training mode: per-channel stats over (B, L) ----------
    col_sum = jnp.sum(x, axis=0, keepdims=True)                          # (1, CinL)
    mean_flat = jnp.dot(col_sum, P, preferred_element_type=jnp.float32)  # (1, CinL)
    xc = x - mean_flat
    sq_sum = jnp.sum(xc * xc, axis=0, keepdims=True)                     # (1, CinL)
    var_flat = jnp.dot(sq_sum, P, preferred_element_type=jnp.float32)    # biased var
    scale = jax.lax.rsqrt(var_flat + 1e-5) * gamma_ref[...]
    xn = xc * scale + beta_ref[...]                                      # (B, CinL)

    # ---- conv1 ("same", zero pad) as one dense matmul + bias + ReLU ---------
    # dropout(p=0.0) is identity.
    h1 = jnp.maximum(
        jnp.dot(xn, m1_ref[...], preferred_element_type=jnp.float32) + b1_ref[...],
        0.0)                                                             # (B, Chid*L)

    # ---- fc_early(cat(flatten(h1), compound)) -------------------------------
    # (self.cls / Sigmoid is declared but never applied in forward()).
    single_ref[...] = (
        jnp.dot(h1, we_ref[...], preferred_element_type=jnp.float32)
        + jnp.dot(cmpd, wec_ref[...], preferred_element_type=jnp.float32)
        + be_ref[0, 0])

    # ---- conv2 ("same") as one dense matmul + bias + ReLU -------------------
    # dropout2(p=0.0) is identity.
    h2 = jnp.maximum(
        jnp.dot(h1, m2_ref[...], preferred_element_type=jnp.float32) + b2_ref[...],
        0.0)                                                             # (B, Cout*L)

    # ---- fc(cat(flatten(h2), compound)) --------------------------------------
    out_ref[...] = (
        jnp.dot(h2, wf_ref[...], preferred_element_type=jnp.float32)
        + jnp.dot(cmpd, wfc_ref[...], preferred_element_type=jnp.float32)
        + bf_ref[0, 0])


def _conv1d_as_matrix(w, L):
    """Torch Conv1d weight (Cout, Cin, K), stride 1, padding=(K-1)//2, lowered
    to a dense matrix M of shape (Cin*L, Cout*L) acting on channel-major
    flattened activations (index c*L + l):  y_flat = x_flat @ M.
    Zero "same" padding is baked in (out-of-range taps simply absent)."""
    Cout, Cin, K = w.shape
    pad = (K - 1) // 2
    li = jnp.arange(L)[:, None]                  # input position
    lo = jnp.arange(L)[None, :]                  # output position
    k = li - lo + pad                            # tap index, (L, L)
    valid = (k >= 0) & (k < K)
    wk = w[:, :, jnp.clip(k, 0, K - 1)]          # (Cout, Cin, L_i, L_o)
    wk = jnp.where(valid[None, None], wk, 0.0)
    return jnp.transpose(wk, (1, 2, 0, 3)).reshape(Cin * L, Cout * L)


def cnn_forward(enc_inputs, compound, p):
    """enc_inputs: (B, max_len, in_dim), compound: (B, cmpd_dim).
    Params in PyTorch layout; all reordering / matrix building is wrapper glue."""
    B, L, Cin = enc_inputs.shape
    Chid = p["w_conv1"].shape[0]
    Cout = p["w_conv2"].shape[0]

    # Channel-major flatten == torch.flatten(enc.transpose(1, 2), 1) order.
    x_flat = jnp.transpose(enc_inputs, (0, 2, 1)).reshape(B, Cin * L)

    # Per-channel average + broadcast projection, prescaled by 1/(B*L).
    p_avg = jnp.kron(jnp.eye(Cin, dtype=jnp.float32),
                     jnp.ones((L, L), jnp.float32)) / float(B * L)
    gamma_flat = jnp.repeat(p["gamma"], L)[None, :]          # (1, Cin*L)
    beta_flat = jnp.repeat(p["beta"], L)[None, :]

    m1 = _conv1d_as_matrix(p["w_conv1"], L)                  # (Cin*L, Chid*L)
    b1_flat = jnp.repeat(p["b_conv1"], L)[None, :]           # (1, Chid*L)
    m2 = _conv1d_as_matrix(p["w_conv2"], L)                  # (Chid*L, Cout*L)
    b2_flat = jnp.repeat(p["b_conv2"], L)[None, :]           # (1, Cout*L)

    # FC weights: flatten order already matches the kernel layout (c*L + l).
    we = p["w_fce"][:, :Chid * L].T                          # (Chid*L, 1)
    we_c = p["w_fce"][:, Chid * L:].T                        # (Cd, 1)
    be = p["b_fce"].reshape(1, 1)
    wf = p["w_fc"][:, :Cout * L].T                           # (Cout*L, 1)
    wf_c = p["w_fc"][:, Cout * L:].T                         # (Cd, 1)
    bf = p["b_fc"].reshape(1, 1)

    args = (x_flat, compound, p_avg, gamma_flat, beta_flat,
            m1, b1_flat, we, we_c, be, m2, b2_flat, wf, wf_c, bf)

    def vmem():
        return pl.BlockSpec(memory_space=pltpu.MemorySpace.VMEM)

    def smem():
        return pl.BlockSpec(memory_space=pltpu.MemorySpace.SMEM)

    in_specs = [vmem(),   # x_flat
                vmem(),   # compound
                vmem(),   # p_avg
                vmem(),   # gamma_flat
                vmem(),   # beta_flat
                vmem(),   # m1
                vmem(),   # b1_flat
                vmem(),   # we
                vmem(),   # we_c
                smem(),   # be   (scalar bias in SMEM)
                vmem(),   # m2
                vmem(),   # b2_flat
                vmem(),   # wf
                vmem(),   # wf_c
                smem()]   # bf   (scalar bias in SMEM)

    out, single = pl.pallas_call(
        cnn_kernel,
        out_shape=(jax.ShapeDtypeStruct((B, 1), jnp.float32),
                   jax.ShapeDtypeStruct((B, 1), jnp.float32)),
        in_specs=in_specs,
        out_specs=(pl.BlockSpec(memory_space=pltpu.MemorySpace.VMEM),
                   pl.BlockSpec(memory_space=pltpu.MemorySpace.VMEM)),
    )(*args)
    return out, single


def reference_forward(enc, cmpd, p):
    """Pure-JAX reference matching the PyTorch module (training-mode BN)."""
    eps = 1e-5
    x = jnp.transpose(enc, (0, 2, 1))                        # (B, Cin, L)
    mean = jnp.mean(x, axis=(0, 2), keepdims=True)
    var = jnp.mean((x - mean) ** 2, axis=(0, 2), keepdims=True)
    xn = (x - mean) / jnp.sqrt(var + eps)
    xn = xn * p["gamma"][None, :, None] + p["beta"][None, :, None]

    def conv1d(inp, w, bias, pad):
        y = jax.lax.conv_general_dilated(
            inp, w, window_strides=(1,), padding=[(pad, pad)],
            dimension_numbers=("NCH", "OIH", "NCH"))
        return y + bias[None, :, None]

    K1 = p["w_conv1"].shape[2]
    K2 = p["w_conv2"].shape[2]
    h1 = jax.nn.relu(conv1d(xn, p["w_conv1"], p["b_conv1"], (K1 - 1) // 2))
    flat1 = jnp.concatenate([h1.reshape(h1.shape[0], -1), cmpd], axis=1)
    single = flat1 @ p["w_fce"].T + p["b_fce"]
    h2 = jax.nn.relu(conv1d(h1, p["w_conv2"], p["b_conv2"], (K2 - 1) // 2))
    flat2 = jnp.concatenate([h2.reshape(h2.shape[0], -1), cmpd], axis=1)
    out = flat2 @ p["w_fc"].T + p["b_fc"]
    return out, single


def init_params(key, in_dim, hid_dim, k1, out_dim, k2, max_len, cmpd_dim):
    ks = jax.random.split(key, 10)

    def u(k, shape, scale):
        return jax.random.uniform(k, shape, jnp.float32, -scale, scale)

    return {
        "gamma": 1.0 + u(ks[0], (in_dim,), 0.1),
        "beta": u(ks[1], (in_dim,), 0.1),
        "w_conv1": u(ks[2], (hid_dim, in_dim, k1), 0.3),
        "b_conv1": u(ks[3], (hid_dim,), 0.3),
        "w_conv2": u(ks[4], (out_dim, hid_dim, k2), 0.3),
        "b_conv2": u(ks[5], (out_dim,), 0.3),
        "w_fce": u(ks[6], (1, max_len * hid_dim + cmpd_dim), 0.1),
        "b_fce": u(ks[7], (1,), 0.1),
        "w_fc": u(ks[8], (1, max_len * out_dim + cmpd_dim), 0.1),
        "b_fc": u(ks[9], (1,), 0.1),
    }


if __name__ == "__main__":
    B = 2
    in_dim, hid_dim, kernal_1 = 4, 8, 3
    out_dim, kernal_2 = 8, 3
    max_len, cmpd_dim = 16, 8

    key = jax.random.PRNGKey(0)
    k_enc, k_cmpd, k_par = jax.random.split(key, 3)
    enc_inputs = jax.random.normal(k_enc, (B, max_len, in_dim), jnp.float32)
    compound = jax.random.normal(k_cmpd, (B, cmpd_dim), jnp.float32)
    params = init_params(k_par, in_dim, hid_dim, kernal_1, out_dim, kernal_2,
                         max_len, cmpd_dim)

    out, single = jax.jit(cnn_forward)(enc_inputs, compound, params)
    jax.block_until_ready((out, single))

    ref_out, ref_single = reference_forward(enc_inputs, compound, params)
    assert out.shape == (B, 1) and single.shape == (B, 1)
    assert float(jnp.max(jnp.abs(out - ref_out))) < 1e-3
    assert float(jnp.max(jnp.abs(single - ref_single))) < 1e-3

    print("KERNEL_OK")
</pallas_src>

<mosaic_0001>
module attributes {stable_mosaic.version = 11 : i64} {
  func.func @cnn_kernel(%arg0: memref<2x64xf32, #tpu.memory_space<vmem>>, %arg1: memref<2x8xf32, #tpu.memory_space<vmem>>, %arg2: memref<64x64xf32, #tpu.memory_space<vmem>>, %arg3: memref<1x64xf32, #tpu.memory_space<vmem>>, %arg4: memref<1x64xf32, #tpu.memory_space<vmem>>, %arg5: memref<64x128xf32, #tpu.memory_space<vmem>>, %arg6: memref<1x128xf32, #tpu.memory_space<vmem>>, %arg7: memref<128x1xf32, #tpu.memory_space<vmem>>, %arg8: memref<8x1xf32, #tpu.memory_space<vmem>>, %arg9: memref<1x1xf32, #tpu.memory_space<smem>>, %arg10: memref<128x128xf32, #tpu.memory_space<vmem>>, %arg11: memref<1x128xf32, #tpu.memory_space<vmem>>, %arg12: memref<128x1xf32, #tpu.memory_space<vmem>>, %arg13: memref<8x1xf32, #tpu.memory_space<vmem>>, %arg14: memref<1x1xf32, #tpu.memory_space<smem>>, %arg15: memref<2x1xf32, #tpu.memory_space<vmem>>, %arg16: memref<2x1xf32, #tpu.memory_space<vmem>>) attributes {dimension_semantics = [], scalar_prefetch = 0 : i64, scratch_operands = 0 : i64, tpu.core_type = #tpu.core_type<tc>} {
    %c0 = arith.constant 0 : index
    %c0_0 = arith.constant 0 : index
    %0 = vector.load %arg0[%c0, %c0_0] : memref<2x64xf32, #tpu.memory_space<vmem>>, vector<2x64xf32>
    %c0_1 = arith.constant 0 : index
    %c0_2 = arith.constant 0 : index
    %1 = vector.load %arg1[%c0_1, %c0_2] : memref<2x8xf32, #tpu.memory_space<vmem>>, vector<2x8xf32>
    %c0_3 = arith.constant 0 : index
    %c0_4 = arith.constant 0 : index
    %2 = vector.load %arg2[%c0_3, %c0_4] : memref<64x64xf32, #tpu.memory_space<vmem>>, vector<64x64xf32>
    %cst = arith.constant dense<0.000000e+00> : vector<64xf32>
    %3 = vector.multi_reduction <add>, %0, %cst [0] : vector<2x64xf32> to vector<64xf32>
    %4 = vector.shape_cast %3 : vector<64xf32> to vector<1x64xf32>
    %cst_5 = arith.constant dense<0.000000e+00> : vector<1x64xf32>
    %5 = tpu.matmul %4, %2, %cst_5 {dimension_numbers = #tpu.dot_dimension_numbers<[1], [0], [0], [1], [0, 0, 1, 1], [], []>} : vector<1x64xf32>, vector<64x64xf32>, vector<1x64xf32> -> vector<1x64xf32>
    %6 = vector.broadcast %5 : vector<1x64xf32> to vector<2x64xf32>
    %7 = arith.subf %0, %6 : vector<2x64xf32>
    %8 = arith.mulf %7, %7 : vector<2x64xf32>
    %cst_6 = arith.constant dense<0.000000e+00> : vector<64xf32>
    %9 = vector.multi_reduction <add>, %8, %cst_6 [0] : vector<2x64xf32> to vector<64xf32>
    %10 = vector.shape_cast %9 : vector<64xf32> to vector<1x64xf32>
    %cst_7 = arith.constant dense<0.000000e+00> : vector<1x64xf32>
    %11 = tpu.matmul %10, %2, %cst_7 {dimension_numbers = #tpu.dot_dimension_numbers<[1], [0], [0], [1], [0, 0, 1, 1], [], []>} : vector<1x64xf32>, vector<64x64xf32>, vector<1x64xf32> -> vector<1x64xf32>
    %cst_8 = arith.constant 9.99999974E-6 : f32
    %12 = vector.broadcast %cst_8 : f32 to vector<1x64xf32>
    %13 = arith.addf %11, %12 : vector<1x64xf32>
    %14 = math.rsqrt %13 : vector<1x64xf32>
    %c0_9 = arith.constant 0 : index
    %c0_10 = arith.constant 0 : index
    %15 = vector.load %arg3[%c0_9, %c0_10] : memref<1x64xf32, #tpu.memory_space<vmem>>, vector<1x64xf32>
    %16 = arith.mulf %14, %15 : vector<1x64xf32>
    %17 = vector.broadcast %16 : vector<1x64xf32> to vector<2x64xf32>
    %18 = arith.mulf %7, %17 : vector<2x64xf32>
    %c0_11 = arith.constant 0 : index
    %c0_12 = arith.constant 0 : index
    %19 = vector.load %arg4[%c0_11, %c0_12] : memref<1x64xf32, #tpu.memory_space<vmem>>, vector<1x64xf32>
    %20 = vector.broadcast %19 : vector<1x64xf32> to vector<2x64xf32>
    %21 = arith.addf %18, %20 : vector<2x64xf32>
    %c0_13 = arith.constant 0 : index
    %c0_14 = arith.constant 0 : index
    %22 = vector.load %arg5[%c0_13, %c0_14] : memref<64x128xf32, #tpu.memory_space<vmem>>, vector<64x128xf32>
    %cst_15 = arith.constant dense<0.000000e+00> : vector<2x128xf32>
    %23 = tpu.matmul %21, %22, %cst_15 {dimension_numbers = #tpu.dot_dimension_numbers<[1], [0], [0], [1], [0, 0, 1, 1], [], []>} : vector<2x64xf32>, vector<64x128xf32>, vector<2x128xf32> -> vector<2x128xf32>
    %c0_16 = arith.constant 0 : index
    %c0_17 = arith.constant 0 : index
    %24 = vector.load %arg6[%c0_16, %c0_17] : memref<1x128xf32, #tpu.memory_space<vmem>>, vector<1x128xf32>
    %25 = vector.broadcast %24 : vector<1x128xf32> to vector<2x128xf32>
    %26 = arith.addf %23, %25 : vector<2x128xf32>
    %cst_18 = arith.constant 0.000000e+00 : f32
    %27 = vector.broadcast %cst_18 : f32 to vector<2x128xf32>
    %28 = arith.maximumf %26, %27 : vector<2x128xf32>
    %c0_19 = arith.constant 0 : index
    %c0_20 = arith.constant 0 : index
    %29 = vector.load %arg7[%c0_19, %c0_20] : memref<128x1xf32, #tpu.memory_space<vmem>>, vector<128x1xf32>
    %cst_21 = arith.constant dense<0.000000e+00> : vector<2x1xf32>
    %30 = tpu.matmul %28, %29, %cst_21 {dimension_numbers = #tpu.dot_dimension_numbers<[1], [0], [0], [1], [0, 0, 1, 1], [], []>} : vector<2x128xf32>, vector<128x1xf32>, vector<2x1xf32> -> vector<2x1xf32>
    %c0_22 = arith.constant 0 : index
    %c0_23 = arith.constant 0 : index
    %31 = vector.load %arg8[%c0_22, %c0_23] : memref<8x1xf32, #tpu.memory_space<vmem>>, vector<8x1xf32>
    %cst_24 = arith.constant dense<0.000000e+00> : vector<2x1xf32>
    %32 = tpu.matmul %1, %31, %cst_24 {dimension_numbers = #tpu.dot_dimension_numbers<[1], [0], [0], [1], [0, 0, 1, 1], [], []>} : vector<2x8xf32>, vector<8x1xf32>, vector<2x1xf32> -> vector<2x1xf32>
    %33 = arith.addf %30, %32 : vector<2x1xf32>
    %c0_25 = arith.constant 0 : index
    %c0_26 = arith.constant 0 : index
    %34 = memref.load %arg9[%c0_25, %c0_26] : memref<1x1xf32, #tpu.memory_space<smem>>
    %35 = vector.broadcast %34 : f32 to vector<2x1xf32>
    %36 = arith.addf %33, %35 : vector<2x1xf32>
    %c0_27 = arith.constant 0 : index
    %c0_28 = arith.constant 0 : index
    %37 = vector.load %arg16[%c0_27, %c0_28] : memref<2x1xf32, #tpu.memory_space<vmem>>, vector<2x1xf32>
    tpu.vector_store %arg16[%c0_27, %c0_28], %36 {strides = array<i32>} : memref<2x1xf32, #tpu.memory_space<vmem>>, vector<2x1xf32>,
    %c0_29 = arith.constant 0 : index
    %c0_30 = arith.constant 0 : index
    %38 = vector.load %arg10[%c0_29, %c0_30] : memref<128x128xf32, #tpu.memory_space<vmem>>, vector<128x128xf32>
    %cst_31 = arith.constant dense<0.000000e+00> : vector<2x128xf32>
    %39 = tpu.matmul %28, %38, %cst_31 {dimension_numbers = #tpu.dot_dimension_numbers<[1], [0], [0], [1], [0, 0, 1, 1], [], []>} : vector<2x128xf32>, vector<128x128xf32>, vector<2x128xf32> -> vector<2x128xf32>
    %c0_32 = arith.constant 0 : index
    %c0_33 = arith.constant 0 : index
    %40 = vector.load %arg11[%c0_32, %c0_33] : memref<1x128xf32, #tpu.memory_space<vmem>>, vector<1x128xf32>
    %41 = vector.broadcast %40 : vector<1x128xf32> to vector<2x128xf32>
    %42 = arith.addf %39, %41 : vector<2x128xf32>
    %cst_34 = arith.constant 0.000000e+00 : f32
    %43 = vector.broadcast %cst_34 : f32 to vector<2x128xf32>
    %44 = arith.maximumf %42, %43 : vector<2x128xf32>
    %c0_35 = arith.constant 0 : index
    %c0_36 = arith.constant 0 : index
    %45 = vector.load %arg12[%c0_35, %c0_36] : memref<128x1xf32, #tpu.memory_space<vmem>>, vector<128x1xf32>
    %cst_37 = arith.constant dense<0.000000e+00> : vector<2x1xf32>
    %46 = tpu.matmul %44, %45, %cst_37 {dimension_numbers = #tpu.dot_dimension_numbers<[1], [0], [0], [1], [0, 0, 1, 1], [], []>} : vector<2x128xf32>, vector<128x1xf32>, vector<2x1xf32> -> vector<2x1xf32>
    %c0_38 = arith.constant 0 : index
    %c0_39 = arith.constant 0 : index
    %47 = vector.load %arg13[%c0_38, %c0_39] : memref<8x1xf32, #tpu.memory_space<vmem>>, vector<8x1xf32>
    %cst_40 = arith.constant dense<0.000000e+00> : vector<2x1xf32>
    %48 = tpu.matmul %1, %47, %cst_40 {dimension_numbers = #tpu.dot_dimension_numbers<[1], [0], [0], [1], [0, 0, 1, 1], [], []>} : vector<2x8xf32>, vector<8x1xf32>, vector<2x1xf32> -> vector<2x1xf32>
    %49 = arith.addf %46, %48 : vector<2x1xf32>
    %c0_41 = arith.constant 0 : index
    %c0_42 = arith.constant 0 : index
    %50 = memref.load %arg14[%c0_41, %c0_42] : memref<1x1xf32, #tpu.memory_space<smem>>
    %51 = vector.broadcast %50 : f32 to vector<2x1xf32>
    %52 = arith.addf %49, %51 : vector<2x1xf32>
    %c0_43 = arith.constant 0 : index
    %c0_44 = arith.constant 0 : index
    %53 = vector.load %arg15[%c0_43, %c0_44] : memref<2x1xf32, #tpu.memory_space<vmem>>, vector<2x1xf32>
    tpu.vector_store %arg15[%c0_43, %c0_44], %52 {strides = array<i32>} : memref<2x1xf32, #tpu.memory_space<vmem>>, vector<2x1xf32>,
    return
  }
}

</mosaic_0001>

<bundles_post_ra>
// kernel: cnn_forward.1
= control target key start
LH: loop header
LB: loop body
LE: loop exit
PB: predicated region body
PF: predicated region fallthrough
CT: control target
= control target key end

     0   :  { %v1141_v0 = vmov 0.0|0.0   ;;  %vm1142_vm0 = vmmov 0   ;;  %v1143_v4 = vmov 0.0   ;;  %vm64_vm1 = vcmask 517120   ;;  %s1537_s2 = inlined_call_operand.vmem [shape: f32[64,64], index: 2, kind: input, shape index: {}]   ;;  %s1538_s0 = inlined_call_operand.vmem [shape: f32[2,64], index: 0, kind: input, shape index: {}]   ;;  %s1539_s5 = inlined_call_operand.vmem [shape: f32[64,128], index: 5, kind: input, shape index: {}]   ;;  %s1540_s8 = inlined_call_operand.vmem [shape: f32[8,1], index: 8, kind: input, shape index: {}]   ;;  %s1541_s1 = inlined_call_operand.vmem [shape: f32[2,8], index: 1, kind: input, shape index: {}]   ;;  %s1542_s7 = inlined_call_operand.vmem [shape: f32[128,1], index: 7, kind: input, shape index: {}]   ;;  %s1543_s3 = inlined_call_operand.vmem [shape: f32[1,64], index: 3, kind: input, shape index: {}]   ;;  %s1544_s10 = inlined_call_operand.vmem [shape: f32[128,128], index: 10, kind: input, shape index: {}]   ;;  %s1545_s4 = inlined_call_operand.vmem [shape: f32[1,64], index: 4, kind: input, shape index: {}]   ;;  %s1546_s6 = inlined_call_operand.vmem [shape: f32[1,128], index: 6, kind: input, shape index: {}]   ;;  %s1547_s13 = inlined_call_operand.vmem [shape: f32[8,1], index: 13, kind: input, shape index: {}]   ;;  %s1548_s12 = inlined_call_operand.vmem [shape: f32[128,1], index: 12, kind: input, shape index: {}]   ;;  %s1549_s11 = inlined_call_operand.vmem [shape: f32[1,128], index: 11, kind: input, shape index: {}]   ;;  %s1550_s9 = inlined_call_operand.<no memory space> [shape: f32[1,1], index: 9, kind: input, shape index: {}]   ;;  %s1551_s16 = inlined_call_operand.vmem [shape: f32[2,1], index: 16, kind: output, shape index: {1}]   ;;  %s1552_s14 = inlined_call_operand.<no memory space> [shape: f32[1,1], index: 14, kind: input, shape index: {}]   ;;  %s1553_s15 = inlined_call_operand.vmem [shape: f32[2,1], index: 15, kind: output, shape index: {0}]  }
   0x1   :  { %1555 = sst [smem:[#allocation4_spill]] %s1537_s2  ;;  %1028 = vmatprep.subr.bf16.mxu0 %v1141_v0  ;;  %872 = vmatprep.mubr.msk.f32.mxu0 %vm1142_vm0, %v1143_v4  ;;  %v54_v7 = vld [vmem:[%s1538_s0] sm:$0x3]  ;;  %vm72_vm2 = vcmask 523264   ;;  %v146_v22 = vlaneseq  ;;  %v249_v38 = vld [vmem:[%s1539_s5 + $0x8] sm:$0xff]  ;;  %v250_v40 = vld [vmem:[%s1539_s5 + $0x10] sm:$0xff] }
   0x2   :  { %s1556_s23 = sld [smem:[#allocation4_spill]]  ;;  %913 = vmatprep.subr.mxu1 %v1143_v4  ;;  %915 = vmatprep.mubr.msk.f32.mxu1 %vm1142_vm0, %v1143_v4  ;;  %v65_v9 = vsel %vm64_vm1, %v54_v7, 0.0  ;;  %v248_v37 = vld [vmem:[%s1539_s5] sm:$0xff]  ;;  %v251_v41 = vld [vmem:[%s1539_s5 + $0x18] sm:$0xff]  ;;  %v253_v44 = vld [vmem:[%s1539_s5 + $0x28] sm:$0xff]  ;;  %vm354_vm3 = vcmask 64512  }
   0x3   :  { %v66_v12 = vrot.slane %v65_v9, 4  ;;  %v1274_v23 = vshrl.u32 %v146_v22, 7  ;;  %v1053_v39 = vpack.c.bf16 %v249_v38, %v248_v37  ;;  %v1056_v42 = vpack.c.bf16 %v251_v41, %v250_v40  ;;  %v252_v43 = vld [vmem:[%s1539_s5 + $0x20] sm:$0xff]  ;;  %v254_v46 = vld [vmem:[%s1539_s5 + $0x30] sm:$0xff]  ;;  %v255_v47 = vld [vmem:[%s1539_s5 + $0x38] sm:$0xff] }
   0x4   :  { %v1059_v45 = vpack.c.bf16 %v253_v44, %v252_v43  ;;  %v1062_v48 = vpack.c.bf16 %v255_v47, %v254_v46  ;;  %v353_v49 = vld [vmem:[%s1540_s8] sm:$0xff]  ;;  %v338_v52 = vld [vmem:[%s1542_s7 + $0x8] sm:$0xff]  ;;  %v339_v54 = vld [vmem:[%s1542_s7 + $0x10] sm:$0xff]  ;;  %vm501_vm4 = vcmask 1024  }
   0x5   :  { %v67_v13 = vadd.f32 %v66_v12, %v65_v9  ;;  %v148_v24 = vsub.s32 0, %v1274_v23  ;;  %v1321_v50 = vld [vmem:[%s1541_s1] sm:$0x3]  ;;  %914 = vmatpush3.msra.mxu1 %v353_v49  ;;  %v340_v55 = vld [vmem:[%s1542_s7 + $0x18] sm:$0xff]  ;;  %v342_v58 = vld [vmem:[%s1542_s7 + $0x28] sm:$0xff] }
   0x6   :  { %v337_v51 = vld [vmem:[%s1542_s7] sm:$0xff]  ;;  %1064 = vmatprep.subr.bf16.mxu1 %v1141_v0  ;;  %916 = vmatmul.mubr.msk.f32.vlgmr.msra.gmra.mrb[0].mxu1 %vm354_vm3, %v1321_v50  ;;  %v1068_v56 = vpack.c.bf16 %v340_v55, %v339_v54  ;;  %v343_v60 = vld [vmem:[%s1542_s7 + $0x30] sm:$0xff]  ;;  %v344_v61 = vld [vmem:[%s1542_s7 + $0x38] sm:$0xff] }
   0x7   :  { %v68_v17 = vrot.slane %v67_v13, 2  ;;  %v1065_v53 = vpack.c.bf16 %v338_v52, %v337_v51  ;;  %950 = vmatprep.mubr.msk.f32.mxu1 %vm1142_vm0, %v1143_v4  ;;  %v341_v57 = vld [vmem:[%s1542_s7 + $0x20] sm:$0xff]  ;;  %v1074_v62 = vpack.c.bf16 %v344_v61, %v343_v60  ;;  %v505_v23 = vld [vmem:[%s1544_s10 + $0x10] sm:$0xff]  ;;  %v600_v60 = vld [vmem:[%s1548_s12 + $0x18] sm:$0xff] }
   0x8   :  { %v56_v1 = vld [vmem:[%s1556_s23] sm:$0xff]  ;;  %v57_v2 = vld [vmem:[%s1556_s23 + $0x8] sm:$0xff]  ;;  %v58_v3 = vld [vmem:[%s1556_s23 + $0x10] sm:$0xff]  ;;  %v1071_v59 = vpack.c.bf16 %v342_v58, %v341_v57 }
   0x9   :  { %v1029_v5 = vpack.c.bf16 %v57_v2, %v56_v1  ;;  %v59_v6 = vld [vmem:[%s1556_s23 + $0x18] sm:$0xff]  ;;  %v60_v10 = vld [vmem:[%s1556_s23 + $0x20] sm:$0xff]  ;;  %v61_v11 = vld [vmem:[%s1556_s23 + $0x28] sm:$0xff]  ;;  %v69_v18 = vadd.f32 %v68_v17, %v67_v13  ;;  %1066 = vmatpush3.bf16.msra.mxu1 %v1065_v53 }
   0xa   :  { %v1032_v8 = vpack.c.bf16 %v59_v6, %v58_v3  ;;  %v1035_v14 = vpack.c.bf16 %v61_v11, %v60_v10  ;;  %v62_v15 = vld [vmem:[%s1556_s23 + $0x30] sm:$0xff]  ;;  %v63_v16 = vld [vmem:[%s1556_s23 + $0x38] sm:$0xff]  ;;  %1067 = vmatprep.subr.bf16.mxu1 %v1141_v0  ;;  %v345_v63 = vld [vmem:[%s1542_s7 + $0x40] sm:$0xff] }
   0xb   :  { %1030 = vmatpush3.bf16.msra.mxu0 %v1029_v5  ;;  %v1038_v19 = vpack.c.bf16 %v63_v16, %v62_v15  ;;  %v70_v20 = vrot.slane %v69_v18, 1  ;;  %v346_v1 = vld [vmem:[%s1542_s7 + $0x48] sm:$0xff]  ;;  %v347_v3 = vld [vmem:[%s1542_s7 + $0x50] sm:$0xff]  ;;  %v233_v13 = vld [vmem:[%s1543_s3] sm:$0x1] }
   0xc   :  { %1031 = vmatprep.subr.bf16.mxu0 %v1141_v0  ;;  %v1077_v2 = vpack.c.bf16 %v346_v1, %v345_v63  ;;  %v503_v17 = vld [vmem:[%s1544_s10] sm:$0xff]  ;;  %v351_v41 = vld [vmem:[%s1542_s7 + $0x70] sm:$0xff]  ;;  %v598_v57 = vld [vmem:[%s1548_s12 + $0x8] sm:$0xff] }
   0xd   :  { %v71_v21 = vadd.f32 %v70_v20, %v69_v18  ;;  %1069 = vmatpush3.bf16.msra.mxu1 %v1068_v56  ;;  %v504_v18 = vld [vmem:[%s1544_s10 + $0x8] sm:$0xff]  ;;  %v515_v38 = vld [vmem:[%s1544_s10 + $0x60] sm:$0xff]  ;;  %v517_v43 = vld [vmem:[%s1544_s10 + $0x70] sm:$0xff] }
   0xe   :  { %1070 = vmatprep.subr.bf16.mxu1 %v1141_v0  ;;  %v769_v49 = vld [vmem:[%s1546_s6] ss:$0 sm:$0xff]  ;;  %v602_v63 = vld [vmem:[%s1548_s12 + $0x28] sm:$0xff] }
   0xf   :  { %1033 = vmatpush3.bf16.msra.mxu0 %v1032_v8  ;;  %v613_v55 = vld [vmem:[%s1547_s13] sm:$0xff] }
  0x10   :  { %1034 = vmatprep.subr.bf16.mxu0 %v1141_v0  ;;  %v597_v56 = vld [vmem:[%s1548_s12] sm:$0xff] }
  0x11   :  { %1072 = vmatpush3.bf16.msra.mxu1 %v1071_v59  ;;  %v1113_v58 = vpack.c.bf16 %v598_v57, %v597_v56  ;;  %v599_v59 = vld [vmem:[%s1548_s12 + $0x10] sm:$0xff] }
  0x12   :  { %1073 = vmatprep.subr.bf16.mxu1 %v1141_v0  ;;  %v1116_v61 = vpack.c.bf16 %v600_v60, %v599_v59 }
  0x13   :  { %1036 = vmatpush3.bf16.msra.mxu0 %v1035_v14 }
  0x14   :  { %1037 = vmatprep.subr.bf16.mxu0 %v1141_v0 }
  0x15   :  { %1075 = vmatpush3.bf16.msra.mxu1 %v1074_v62  ;;  %v601_v62 = vld [vmem:[%s1548_s12 + $0x20] sm:$0xff] }
  0x16   :  { %1076 = vmatprep.subr.bf16.mxu1 %v1141_v0  ;;  %v1119_v1 = vpack.c.bf16 %v602_v63, %v601_v62 }
  0x17   :  { %1039 = vmatpush3.bf16.msra.mxu0 %v1038_v19 }
  0x18   :  { %1040 = vmatprep.subr.bf16.mxu0 %v1141_v0 }
  0x19   :  { %1078 = vmatpush3.bf16.msra.mxu1 %v1077_v2 }
  0x1a   :  { %873 = vmatmul.mubr.msk.f32.vlgmr.msra.gmra.mrb[0].mxu0 %vm72_vm2, %v71_v21  ;;  %1079 = vmatprep.subr.bf16.mxu1 %v1141_v0  ;;  %v1089_v21 = vpack.c.bf16 %v504_v18, %v503_v17  ;;  %v499_v18 = vstv %s1550_s9 }
  0x1b   :  { %1042 = vmatpush3.bf16.msra.mxu0 %v1029_v5  ;;  %891 = vmatprep.mubr.msk.f32.mxu0 %vm1142_vm0, %v1143_v4  ;;  %v348_v5 = vld [vmem:[%s1542_s7 + $0x58] sm:$0xff] }
  0x1c   :  { %1043 = vmatprep.subr.bf16.mxu0 %v1141_v0  ;;  %v1080_v6 = vpack.c.bf16 %v348_v5, %v347_v3  ;;  %v605_v3 = vld [vmem:[%s1548_s12 + $0x40] sm:$0xff]  ;;  %v606_v5 = vld [vmem:[%s1548_s12 + $0x48] sm:$0xff] }
  0x1e   :  { %1081 = vmatpush3.bf16.msra.mxu1 %v1080_v6  ;;  %v1125_v6 = vpack.c.bf16 %v606_v5, %v605_v3 }
  0x1f   :  { %1045 = vmatpush3.bf16.msra.mxu0 %v1032_v8  ;;  %v350_v8 = vld [vmem:[%s1542_s7 + $0x68] sm:$0xff]  ;;  %1082 = vmatprep.subr.bf16.mxu1 %v1141_v0 }
  0x20   :  { %1046 = vmatprep.subr.bf16.mxu0 %v1141_v0 }
  0x23   :  { %1048 = vmatpush3.bf16.msra.mxu0 %v1035_v14 }
  0x24   :  { %1049 = vmatprep.subr.bf16.mxu0 %v1141_v0 }
  0x27   :  { %1051 = vmatpush3.bf16.msra.mxu0 %v1038_v19  ;;  %v768_v19 = vld [vmem:[%s1545_s4] ss:$0 sm:$0xff] }
  0x28   :  { %1052 = vmatprep.subr.bf16.mxu0 %v1141_v0 }
  0xd9   :  { %v1451_v47 = vpop.f32.mrb[0].mxu1 }
  0xed   :  { %v142_v25 = vpop.f32.mrb[0].mxu0 }
  0xee   :  { %v149_v26 = vrot.slane %v142_v25, %v148_v24  ;;  %v874_v27 = vpop.f32.mrb[1].mxu0 }
  0xef   :  { %v508_v27 = vld [vmem:[%s1544_s10 + $0x28] sm:$0xff] }
  0xf0   :  { %v1279_v28 = vsub.f32 %v54_v7, %v149_v26  ;;  %v349_v7 = vld [vmem:[%s1542_s7 + $0x60] sm:$0xff] }
  0xf1   :  { %v1083_v9 = vpack.c.bf16 %v350_v8, %v349_v7  ;;  %v507_v26 = vld [vmem:[%s1544_s10 + $0x20] sm:$0xff]  ;;  %v607_v7 = vld [vmem:[%s1548_s12 + $0x50] sm:$0xff]  ;;  %v608_v8 = vld [vmem:[%s1548_s12 + $0x58] sm:$0xff] }
  0xf2   :  { %v151_v29 = vmul.f32 %v1279_v28, %v1279_v28 }
  0xf3   :  { %1084 = vmatpush3.bf16.msra.mxu1 %v1083_v9  ;;  %v1128_v9 = vpack.c.bf16 %v608_v8, %v607_v7 }
  0xf4   :  { %v152_v30 = vsel %vm64_vm1, %v151_v29, 0.0  ;;  %1085 = vmatprep.subr.bf16.mxu1 %v1141_v0  ;;  %v509_v29 = vld [vmem:[%s1544_s10 + $0x30] sm:$0xff] }
  0xf5   :  { %v153_v31 = vrot.slane %v152_v30, 4 }
  0xf7   :  { %v154_v32 = vadd.f32 %v153_v31, %v152_v30  ;;  %v510_v30 = vld [vmem:[%s1544_s10 + $0x38] sm:$0xff] }
  0xf8   :  { %v1098_v31 = vpack.c.bf16 %v510_v30, %v509_v29 }
  0xf9   :  { %v155_v33 = vrot.slane %v154_v32, 2 }
  0xfb   :  { %v156_v34 = vadd.f32 %v155_v33, %v154_v32  ;;  %v511_v32 = vld [vmem:[%s1544_s10 + $0x40] sm:$0xff]  ;;  %v512_v33 = vld [vmem:[%s1544_s10 + $0x48] sm:$0xff] }
  0xfd   :  { %v157_v35 = vrot.slane %v156_v34, 1 }
  0xff   :  { %v158_v36 = vadd.f32 %v157_v35, %v156_v34  ;;  %v1101_v34 = vpack.c.bf16 %v512_v33, %v511_v32  ;;  %v513_v35 = vld [vmem:[%s1544_s10 + $0x50] sm:$0xff] }
 0x101   :  { %892 = vmatmul.mubr.msk.f32.vlgmr.msra.gmra.mrb[2].mxu0 %vm72_vm2, %v158_v36  ;;  %v514_v36 = vld [vmem:[%s1544_s10 + $0x58] sm:$0xff] }
 0x102   :  { %910 = vmatprep.mubr.msk.f32.mxu0 %vm1142_vm0, %v1143_v4  ;;  %1054 = vmatpush3.bf16.msra.mxu0 %v1053_v39  ;;  %v1104_v37 = vpack.c.bf16 %v514_v36, %v513_v35  ;;  %v516_v39 = vld [vmem:[%s1544_s10 + $0x68] sm:$0xff] }
 0x103   :  { %1055 = vmatprep.subr.bf16.mxu0 %v1141_v0  ;;  %v1107_v40 = vpack.c.bf16 %v516_v39, %v515_v38 }
 0x106   :  { %1057 = vmatpush3.bf16.msra.mxu0 %v1056_v42  ;;  %v352_v42 = vld [vmem:[%s1542_s7 + $0x78] sm:$0xff] }
 0x107   :  { %1058 = vmatprep.subr.bf16.mxu0 %v1141_v0  ;;  %v1086_v44 = vpack.c.bf16 %v352_v42, %v351_v41 }
 0x109   :  { %1087 = vmatpush3.bf16.msra.mxu1 %v1086_v44 }
 0x10a   :  { %1060 = vmatpush3.bf16.msra.mxu0 %v1059_v45  ;;  %v518_v45 = vld [vmem:[%s1544_s10 + $0x78] sm:$0xff]  ;;  %988 = vmatprep.subr.mxu1 %v1143_v4 }
 0x10b   :  { %1061 = vmatprep.subr.bf16.mxu0 %v1141_v0  ;;  %v1110_v46 = vpack.c.bf16 %v518_v45, %v517_v43 }
 0x10e   :  { %1063 = vmatpush3.bf16.msra.mxu0 %v1062_v48  ;;  %v917_v48 = vpop.f32.mrb[1].mxu1 }
 0x10f   :  { %1088 = vmatprep.subr.bf16.mxu0 %v1141_v0 }
 0x1d4   :  { %v228_v10 = vpop.f32.mrb[2].mxu0 }
 0x1d5   :  { %v229_v11 = vadd.f32 1e-05, %v228_v10  ;;  %v893_v12 = vpop.f32.mrb[3].mxu0  ;;  %v609_v10 = vld [vmem:[%s1548_s12 + $0x60] sm:$0xff] }
 0x1d7   :  { %1139 = vrsqrt.f32 %v229_v11  ;;  %v610_v11 = vld [vmem:[%s1548_s12 + $0x68] sm:$0xff] }
 0x1d8   :  { %v1131_v12 = vpack.c.bf16 %v610_v11, %v609_v10 }
 0x1e1   :  { %v1140_v14 = vpop.eup %1139 }
 0x1e2   :  { %v234_v15 = vmul.f32 %v1140_v14, %v233_v13  ;;  %v611_v13 = vld [vmem:[%s1548_s12 + $0x70] sm:$0xff]  ;;  %v612_v14 = vld [vmem:[%s1548_s12 + $0x78] sm:$0xff] }
 0x1e4   :  { %v238_v16 = vrot.slane %v234_v15, %v148_v24  ;;  %v506_v24 = vld [vmem:[%s1544_s10 + $0x18] sm:$0xff]  ;;  %v1134_v15 = vpack.c.bf16 %v612_v14, %v611_v13 }
 0x1e5   :  { %v1092_v25 = vpack.c.bf16 %v506_v24, %v505_v23 }
 0x1e6   :  { %v239_v20 = vmul.f32 %v238_v16, %v1279_v28  ;;  %v1095_v28 = vpack.c.bf16 %v508_v27, %v507_v26  ;;  %v772_v16 = vld [vmem:[%s1549_s11] ss:$0 sm:$0xff] }
 0x1e8   :  { %v247_v22 = vadd.f32 %v768_v19, %v239_v20 }
 0x1ea   :  { %911 = vmatmul.mubr.msk.f32.vlgmr.msra.gmra.mrb[4].mxu0 %vm72_vm2, %v247_v22 }
 0x1eb   :  { %1090 = vmatpush3.bf16.msra.mxu0 %v1089_v21  ;;  %985 = vmatprep.mubr.msk.f32.mxu0 %vm1142_vm0, %v1143_v4 }
 0x1ec   :  { %1091 = vmatprep.subr.bf16.mxu0 %v1141_v0 }
 0x1ef   :  { %1093 = vmatpush3.bf16.msra.mxu0 %v1092_v25 }
 0x1f0   :  { %1094 = vmatprep.subr.bf16.mxu0 %v1141_v0 }
 0x1f3   :  { %1096 = vmatpush3.bf16.msra.mxu0 %v1095_v28  ;;  %v755_v28 = vstv %s1552_s14 }
 0x1f4   :  { %1097 = vmatprep.subr.bf16.mxu0 %v1141_v0 }
 0x1f7   :  { %1099 = vmatpush3.bf16.msra.mxu0 %v1098_v31 }
 0x1f8   :  { %1100 = vmatprep.subr.bf16.mxu0 %v1141_v0 }
 0x1fb   :  { %1102 = vmatpush3.bf16.msra.mxu0 %v1101_v34 }
 0x1fc   :  { %1103 = vmatprep.subr.bf16.mxu0 %v1141_v0 }
 0x1ff   :  { %1105 = vmatpush3.bf16.msra.mxu0 %v1104_v37 }
 0x200   :  { %1106 = vmatprep.subr.bf16.mxu0 %v1141_v0 }
 0x203   :  { %1108 = vmatpush3.bf16.msra.mxu0 %v1107_v40 }
 0x204   :  { %1109 = vmatprep.subr.bf16.mxu0 %v1141_v0 }
 0x207   :  { %1111 = vmatpush3.bf16.msra.mxu0 %v1110_v46 }
 0x2bd   :  { %v332_v51 = vpop.f32.mrb[4].mxu0 }
 0x2be   :  { %v333_v52 = vadd.f32 %v769_v49, %v332_v51  ;;  %v912_v53 = vpop.f32.mrb[5].mxu0 }
 0x2c0   :  { %v336_v54 = vmax.f32 %v333_v52, 0.0 }
 0x2c2   :  { %951 = vmatmul.mubr.f32.vlgmr.msra.gmra.mrb[2].mxu1 %v336_v54  ;;  %986 = vmatmul.mubr.f32.vlgmr.msra.gmra.mrb[6].mxu0 %v336_v54 }
 0x2c3   :  { %989 = vmatpush3.msra.mxu1 %v613_v55  ;;  %990 = vmatprep.mubr.msk.f32.mxu1 %vm1142_vm0, %v1143_v4 }
 0x2c4   :  { %1112 = vmatprep.subr.bf16.mxu1 %v1141_v0 }
 0x2c6   :  { %991 = vmatmul.mubr.msk.f32.vlgmr.msra.gmra.mrb[4].mxu1 %vm354_vm3, %v1321_v50  ;;  %v603_v50 = vld [vmem:[%s1548_s12 + $0x30] sm:$0xff] }
 0x2c7   :  { %1114 = vmatpush3.bf16.msra.mxu1 %v1113_v58  ;;  %1025 = vmatprep.mubr.msk.f32.mxu1 %vm1142_vm0, %v1143_v4  ;;  %v604_v4 = vld [vmem:[%s1548_s12 + $0x38] sm:$0xff] }
 0x2c8   :  { %1115 = vmatprep.subr.bf16.mxu1 %v1141_v0  ;;  %v1122_v2 = vpack.c.bf16 %v604_v4, %v603_v50 }
 0x2cb   :  { %1117 = vmatpush3.bf16.msra.mxu1 %v1116_v61 }
 0x2cc   :  { %1118 = vmatprep.subr.bf16.mxu1 %v1141_v0 }
 0x2cf   :  { %1120 = vmatpush3.bf16.msra.mxu1 %v1119_v1 }
 0x2d0   :  { %1121 = vmatprep.subr.bf16.mxu1 %v1141_v0 }
 0x2d3   :  { %1123 = vmatpush3.bf16.msra.mxu1 %v1122_v2 }
 0x2d4   :  { %1124 = vmatprep.subr.bf16.mxu1 %v1141_v0 }
 0x2d7   :  { %1126 = vmatpush3.bf16.msra.mxu1 %v1125_v6 }
 0x2d8   :  { %1127 = vmatprep.subr.bf16.mxu1 %v1141_v0 }
 0x2db   :  { %1129 = vmatpush3.bf16.msra.mxu1 %v1128_v9 }
 0x2dc   :  { %1130 = vmatprep.subr.bf16.mxu1 %v1141_v0 }
 0x2df   :  { %1132 = vmatpush3.bf16.msra.mxu1 %v1131_v12 }
 0x2e0   :  { %1133 = vmatprep.subr.bf16.mxu1 %v1141_v0 }
 0x2e3   :  { %1135 = vmatpush3.bf16.msra.mxu1 %v1134_v15 }
 0x395   :  { %v494_v17 = vpop.f32.mrb[2].mxu1  ;;  %v592_v0 = vpop.f32.mrb[6].mxu0 }
 0x396   :  { %v495_v19 = vadd.f32 %v494_v17, %v1451_v47  ;;  %v593_v20 = vadd.f32 %v772_v16, %v592_v0  ;;  %v952_v21 = vpop.f32.mrb[3].mxu1  ;;  %v987_v22 = vpop.f32.mrb[7].mxu0 }
 0x398   :  { %v500_v23 = vadd.f32 %v499_v18, %v495_v19  ;;  %v596_v24 = vmax.f32 %v593_v20, 0.0 }
 0x399   :  { %v680_v25 = vpop.f32.mrb[4].mxu1 }
 0x39a   :  { %502 = vst.msk [vmem:[%s1551_s16] sm:$0x3] %vm501_vm4, %v500_v23  ;;  %1026 = vmatmul.mubr.f32.vlgmr.msra.gmra.mrb[6].mxu1 %v596_v24  ;;  %v992_v26 = vpop.f32.mrb[5].mxu1 }
 0x46d   :  { %v750_v27 = vpop.f32.mrb[6].mxu1 }
 0x46e   :  { %v751_v29 = vadd.f32 %v750_v27, %v680_v25  ;;  %v1027_v30 = vpop.f32.mrb[7].mxu1 }
 0x470   :  { %v756_v31 = vadd.f32 %v755_v28, %v751_v29 }
 0x472   :  { %757 = vst.msk [vmem:[%s1553_s15] sm:$0x3] %vm501_vm4, %v756_v31 }

</bundles_post_ra>
